<compile_context>
chip_gen: v7x
topology: tpu7x:2x2x1
jax: 0.10.0
libtpu: 0.0.40
codegen_flags: <defaults>
</compile_context>

<pallas_src>
import jax
import jax.numpy as jnp
from jax.experimental import pallas as pl
from jax.experimental.pallas import tpu as pltpu

NUM_FEATURES = 4      # data.num_features
EMBED = 32            # embedding_size (args.embed_dims)
NUM_CLASSES = 3       # data.num_classes
OUT_PAD = 128         # lane-dense padded width for the output slabs


# -----------------------------------------------------------------------------
# Fused kernel: 4 x (GCNConv + tanh)  ->  [global_max_pool || global_mean_pool]
#               ->  Linear (both outputs zero-padded to 128 lanes).
#
# Node features live transposed ([features, nodes]); with A_hat^T the layer is
#     h <- tanh( (W^T @ h) @ A_hat^T + b_col )
# which is exactly tanh(A_hat @ (h @ W) + b) transposed.
# -----------------------------------------------------------------------------
def gcn_fused_kernel(at_ref, xt_ref,
                     wt0_ref, b0_ref, wt1_ref, b1_ref,
                     wt2_ref, b2_ref, wt3_ref, b3_ref,
                     mask_t_ref, inv_cnt_ref, neg_mask_ref,
                     w_pad_ref, b_pad_ref,
                     out_ref, hid_ref):
    a_t = at_ref[...]                        # (N, N) bf16 -- resident for all 4 layers
    h = xt_ref[...]                          # (F, N) bf16
    h_f32 = None

    # Four GCN layers, statically unrolled; bf16 operands, f32 accumulation.
    for wt_ref, b_ref in ((wt0_ref, b0_ref), (wt1_ref, b1_ref),
                          (wt2_ref, b2_ref), (wt3_ref, b3_ref)):
        z = jnp.dot(wt_ref[...], h,
                    preferred_element_type=jnp.float32)             # (E, N) f32 acc
        agg = jnp.dot(z.astype(jnp.bfloat16), a_t,
                      preferred_element_type=jnp.float32)            # (E, N) f32 acc
        h_f32 = jnp.tanh(agg + b_ref[...])                           # bias/tanh in f32
        h = h_f32.astype(jnp.bfloat16)                               # bf16 between layers

    # ---- readout in the resident [E, N] layout ----
    g = mask_t_ref.shape[1]
    e = h_f32.shape[0]

    # Mean pool: (E, N) @ (N, G) -> (E, G), then scale by 1/count.
    gap_t = (jnp.dot(h, mask_t_ref[...], preferred_element_type=jnp.float32)
             * inv_cnt_ref[...])                                     # (E, G) f32

    # Max pool: additive lane mask (0 / -1e30) + lane (XLU) reduce, per graph.
    neg = neg_mask_ref[...]                                          # (G, N) f32
    cols = []
    for gi in range(g):
        masked = h_f32 + neg[gi:gi + 1, :]                           # (E, N) f32
        cols.append(jnp.max(masked, axis=-1, keepdims=True))         # (E, 1)
    gmp_t = jnp.concatenate(cols, axis=1)                            # (E, G) f32

    # Only the tiny (E, G) results get transposed.
    gmp = gmp_t.T                                                    # (G, E)
    gap = gap_t.T                                                    # (G, E)

    # hidden slab: [gmp || gap || zeros] -> lane-dense (G, 128) store.
    pad = jnp.zeros((g, hid_ref.shape[1] - 2 * e), jnp.float32)
    hid = jnp.concatenate([gmp, gap, pad], axis=1)                   # (G, 128)
    hid_ref[...] = hid

    # Single classifier dot against the padded weight slab.
    out_ref[...] = (jnp.dot(hid, w_pad_ref[...],
                            preferred_element_type=jnp.float32)
                    + b_pad_ref[...])


# -----------------------------------------------------------------------------
# Glue (plain JAX): adjacency normalization, batch masks, parameter init.
# -----------------------------------------------------------------------------
def build_normalized_adjacency(edge_index, num_nodes):
    """Dense D^-1/2 (A + I) D^-1/2 with A_hat[target, source] (PyG gcn_norm)."""
    src = edge_index[0]
    dst = edge_index[1]
    loops = jnp.arange(num_nodes, dtype=src.dtype)
    src = jnp.concatenate([src, loops])
    dst = jnp.concatenate([dst, loops])
    deg = jnp.zeros((num_nodes,), jnp.float32).at[dst].add(1.0)
    dinv = jnp.where(deg > 0, 1.0 / jnp.sqrt(deg), 0.0)
    norm = dinv[dst] * dinv[src]
    a = jnp.zeros((num_nodes, num_nodes), jnp.float32).at[dst, src].add(norm)
    return a


def build_batch_mask(batch_index, num_graphs):
    return (batch_index[None, :] == jnp.arange(num_graphs)[:, None]).astype(jnp.float32)


def init_params(key):
    ks = jax.random.split(key, 10)

    def lin(k, fan_in, fan_out):
        return (jax.random.normal(k, (fan_in, fan_out), jnp.float32)
                * (1.0 / jnp.sqrt(jnp.float32(fan_in))))

    dims = [(NUM_FEATURES, EMBED), (EMBED, EMBED), (EMBED, EMBED), (EMBED, EMBED)]
    params = {}
    for i, (fi, fo) in enumerate(dims):
        params[f"w{i}"] = lin(ks[2 * i], fi, fo)
        params[f"b{i}"] = 0.1 * jax.random.normal(ks[2 * i + 1], (1, fo), jnp.float32)
    params["w_out"] = lin(ks[8], 2 * EMBED, NUM_CLASSES)
    params["b_out"] = 0.01 * jax.random.normal(ks[9], (1, NUM_CLASSES), jnp.float32)
    return params


def gcn_forward(params, x, edge_index, batch_index, num_graphs):
    n = x.shape[0]
    g = num_graphs
    e = EMBED
    c = NUM_CLASSES

    a_hat = build_normalized_adjacency(edge_index, n)
    a_t_bf16 = a_hat.T.astype(jnp.bfloat16)           # aggregation uses A^T (bf16 stream)
    x_t_bf16 = x.T.astype(jnp.bfloat16)                # (F, N) lane-dense node layout

    mask = build_batch_mask(batch_index, g)            # (G, N) f32 {0,1}
    mask_t = mask.T.astype(jnp.bfloat16)               # (N, G) for the mean-pool dot
    cnt = jnp.maximum(jnp.sum(mask, axis=1), 1.0)      # (G,)
    inv_cnt = (1.0 / cnt).reshape(1, g).astype(jnp.float32)      # (1, G)
    neg_mask = ((1.0 - mask) * (-1e30)).astype(jnp.float32)      # (G, N): 0 / -1e30

    # bf16 transposed layer weights / f32 column biases for the [E, N] layout.
    wts = [params[f"w{i}"].T.astype(jnp.bfloat16) for i in range(4)]   # (E_out, E_in)
    bcs = [params[f"b{i}"].reshape(-1, 1) for i in range(4)]           # (E_out, 1) f32

    # Padded classifier slab: one (128, 128) weight, rows 0:2E = w_out, cols 0:C real.
    w_pad = jnp.zeros((OUT_PAD, OUT_PAD), jnp.float32).at[:2 * e, :c].set(params["w_out"])
    b_pad = jnp.zeros((1, OUT_PAD), jnp.float32).at[:, :c].set(params["b_out"])

    operands = ([a_t_bf16, x_t_bf16]
                + [t for pair in zip(wts, bcs) for t in pair]
                + [mask_t, inv_cnt, neg_mask, w_pad, b_pad])

    # VMEM budget: actual single-buffered footprint (no grid => no double
    # buffering) + live intermediates + headroom; ceiling from the chip's
    # actual VMEM capacity (64 MiB on v7x, 128 MiB on v5e/v6e).
    io_bytes = sum(int(t.size) * t.dtype.itemsize for t in operands)
    io_bytes += 2 * g * OUT_PAD * 4                           # the two output slabs
    interm_bytes = 8 * e * n * 4                              # a handful of (E, N) temporaries
    footprint = io_bytes + interm_bytes
    try:
        vmem_cap = int(pltpu.get_tpu_info().vmem_capacity_bytes)
    except Exception:
        vmem_cap = 64 * 1024 * 1024
    vmem_limit = int(min(max(2 * footprint + (4 << 20), 1 << 20), (3 * vmem_cap) // 4))

    vmem_spec = pl.BlockSpec(memory_space=pltpu.MemorySpace.VMEM)
    out_pad, hid_pad = pl.pallas_call(
        gcn_fused_kernel,
        out_shape=[jax.ShapeDtypeStruct((g, OUT_PAD), jnp.float32),
                   jax.ShapeDtypeStruct((g, OUT_PAD), jnp.float32)],
        in_specs=[vmem_spec] * len(operands),
        out_specs=[vmem_spec, vmem_spec],
        compiler_params=pltpu.CompilerParams(vmem_limit_bytes=vmem_limit),
    )(*operands)

    return out_pad[:, :c], hid_pad[:, :2 * e]


def gcn_forward_ref(params, x, edge_index, batch_index, num_graphs):
    """Pure-JAX f32 reference for sanity checking."""
    n = x.shape[0]
    a_hat = build_normalized_adjacency(edge_index, n)
    mask = build_batch_mask(batch_index, num_graphs)
    cnt = jnp.maximum(mask.sum(axis=1, keepdims=True), 1.0)
    h = x
    for i in range(4):
        h = jnp.tanh(a_hat @ (h @ params[f"w{i}"]) + params[f"b{i}"])
    gmp = jnp.max(jnp.where(mask[:, :, None] > 0, h[None, :, :], -1e30), axis=1)
    gap = (mask @ h) / cnt
    hidden = jnp.concatenate([gmp, gap], axis=1)
    out = hidden @ params["w_out"] + params["b_out"]
    return out, hidden


if __name__ == "__main__":
    key = jax.random.PRNGKey(0)
    pkey, xkey = jax.random.split(key)
    params = init_params(pkey)

    # Two graphs of 64 nodes each (128 nodes total => lane-dense node axis),
    # ring topology per graph, edges stored in both directions (undirected).
    N = 128
    G = 2
    per_graph = N // G
    x = jax.random.normal(xkey, (N, NUM_FEATURES), jnp.float32)

    def ring_edges(offset, n):
        s = [offset + i for i in range(n)]
        t = [offset + (i + 1) % n for i in range(n)]
        return s + t, t + s  # both directions

    srcs, dsts = [], []
    for gi in range(G):
        s, t = ring_edges(gi * per_graph, per_graph)
        srcs += s
        dsts += t
    edge_index = jnp.array([srcs, dsts], dtype=jnp.int32)          # [2, 2*N]
    batch_index = jnp.repeat(jnp.arange(G, dtype=jnp.int32), per_graph)

    out, hidden = gcn_forward(params, x, edge_index, batch_index, G)
    out = jax.block_until_ready(out)
    hidden = jax.block_until_ready(hidden)

    out_ref, hidden_ref = gcn_forward_ref(params, x, edge_index, batch_index, G)
    assert out.shape == (G, NUM_CLASSES) and hidden.shape == (G, 2 * EMBED)
    # bf16 operands (x, W, h, A_hat) on the MXU paths through 4 layers =>
    # tolerance loosened vs. the pure-f32 reference.
    assert jnp.allclose(hidden, hidden_ref, atol=3e-2, rtol=3e-2), \
        float(jnp.max(jnp.abs(hidden - hidden_ref)))
    assert jnp.allclose(out, out_ref, atol=3e-2, rtol=3e-2), \
        float(jnp.max(jnp.abs(out - out_ref)))

    print("KERNEL_OK")
</pallas_src>

<mosaic_0001>
module attributes {stable_mosaic.version = 11 : i64} {
  func.func @gcn_fused_kernel(%arg0: memref<128x128xbf16, #tpu.memory_space<vmem>>, %arg1: memref<4x128xbf16, #tpu.memory_space<vmem>>, %arg2: memref<32x4xbf16, #tpu.memory_space<vmem>>, %arg3: memref<32x1xf32, #tpu.memory_space<vmem>>, %arg4: memref<32x32xbf16, #tpu.memory_space<vmem>>, %arg5: memref<32x1xf32, #tpu.memory_space<vmem>>, %arg6: memref<32x32xbf16, #tpu.memory_space<vmem>>, %arg7: memref<32x1xf32, #tpu.memory_space<vmem>>, %arg8: memref<32x32xbf16, #tpu.memory_space<vmem>>, %arg9: memref<32x1xf32, #tpu.memory_space<vmem>>, %arg10: memref<128x2xbf16, #tpu.memory_space<vmem>>, %arg11: memref<1x2xf32, #tpu.memory_space<vmem>>, %arg12: memref<2x128xf32, #tpu.memory_space<vmem>>, %arg13: memref<128x128xf32, #tpu.memory_space<vmem>>, %arg14: memref<1x128xf32, #tpu.memory_space<vmem>>, %arg15: memref<2x128xf32, #tpu.memory_space<vmem>>, %arg16: memref<2x128xf32, #tpu.memory_space<vmem>>) attributes {dimension_semantics = [], scalar_prefetch = 0 : i64, scratch_operands = 0 : i64, tpu.core_type = #tpu.core_type<tc>} {
    %c0 = arith.constant 0 : index
    %c0_0 = arith.constant 0 : index
    %0 = vector.load %arg0[%c0, %c0_0] : memref<128x128xbf16, #tpu.memory_space<vmem>>, vector<128x128xbf16>
    %c0_1 = arith.constant 0 : index
    %c0_2 = arith.constant 0 : index
    %1 = vector.load %arg1[%c0_1, %c0_2] : memref<4x128xbf16, #tpu.memory_space<vmem>>, vector<4x128xbf16>
    %c0_3 = arith.constant 0 : index
    %c0_4 = arith.constant 0 : index
    %2 = vector.load %arg2[%c0_3, %c0_4] : memref<32x4xbf16, #tpu.memory_space<vmem>>, vector<32x4xbf16>
    %cst = arith.constant dense<0.000000e+00> : vector<32x128xf32>
    %3 = tpu.matmul %2, %1, %cst {dimension_numbers = #tpu.dot_dimension_numbers<[1], [0], [0], [1], [0, 0, 1, 1], [], []>} : vector<32x4xbf16>, vector<4x128xbf16>, vector<32x128xf32> -> vector<32x128xf32>
    %4 = arith.truncf %3 : vector<32x128xf32> to vector<32x128xbf16>
    %cst_5 = arith.constant dense<0.000000e+00> : vector<32x128xf32>
    %5 = tpu.matmul %4, %0, %cst_5 {dimension_numbers = #tpu.dot_dimension_numbers<[1], [0], [0], [1], [0, 0, 1, 1], [], []>} : vector<32x128xbf16>, vector<128x128xbf16>, vector<32x128xf32> -> vector<32x128xf32>
    %c0_6 = arith.constant 0 : index
    %c0_7 = arith.constant 0 : index
    %6 = vector.load %arg3[%c0_6, %c0_7] : memref<32x1xf32, #tpu.memory_space<vmem>>, vector<32x1xf32>
    %7 = vector.broadcast %6 : vector<32x1xf32> to vector<32x128xf32>
    %8 = arith.addf %5, %7 : vector<32x128xf32>
    %9 = math.tanh %8 : vector<32x128xf32>
    %10 = arith.truncf %9 : vector<32x128xf32> to vector<32x128xbf16>
    %c0_8 = arith.constant 0 : index
    %c0_9 = arith.constant 0 : index
    %11 = vector.load %arg4[%c0_8, %c0_9] : memref<32x32xbf16, #tpu.memory_space<vmem>>, vector<32x32xbf16>
    %cst_10 = arith.constant dense<0.000000e+00> : vector<32x128xf32>
    %12 = tpu.matmul %11, %10, %cst_10 {dimension_numbers = #tpu.dot_dimension_numbers<[1], [0], [0], [1], [0, 0, 1, 1], [], []>} : vector<32x32xbf16>, vector<32x128xbf16>, vector<32x128xf32> -> vector<32x128xf32>
    %13 = arith.truncf %12 : vector<32x128xf32> to vector<32x128xbf16>
    %cst_11 = arith.constant dense<0.000000e+00> : vector<32x128xf32>
    %14 = tpu.matmul %13, %0, %cst_11 {dimension_numbers = #tpu.dot_dimension_numbers<[1], [0], [0], [1], [0, 0, 1, 1], [], []>} : vector<32x128xbf16>, vector<128x128xbf16>, vector<32x128xf32> -> vector<32x128xf32>
    %c0_12 = arith.constant 0 : index
    %c0_13 = arith.constant 0 : index
    %15 = vector.load %arg5[%c0_12, %c0_13] : memref<32x1xf32, #tpu.memory_space<vmem>>, vector<32x1xf32>
    %16 = vector.broadcast %15 : vector<32x1xf32> to vector<32x128xf32>
    %17 = arith.addf %14, %16 : vector<32x128xf32>
    %18 = math.tanh %17 : vector<32x128xf32>
    %19 = arith.truncf %18 : vector<32x128xf32> to vector<32x128xbf16>
    %c0_14 = arith.constant 0 : index
    %c0_15 = arith.constant 0 : index
    %20 = vector.load %arg6[%c0_14, %c0_15] : memref<32x32xbf16, #tpu.memory_space<vmem>>, vector<32x32xbf16>
    %cst_16 = arith.constant dense<0.000000e+00> : vector<32x128xf32>
    %21 = tpu.matmul %20, %19, %cst_16 {dimension_numbers = #tpu.dot_dimension_numbers<[1], [0], [0], [1], [0, 0, 1, 1], [], []>} : vector<32x32xbf16>, vector<32x128xbf16>, vector<32x128xf32> -> vector<32x128xf32>
    %22 = arith.truncf %21 : vector<32x128xf32> to vector<32x128xbf16>
    %cst_17 = arith.constant dense<0.000000e+00> : vector<32x128xf32>
    %23 = tpu.matmul %22, %0, %cst_17 {dimension_numbers = #tpu.dot_dimension_numbers<[1], [0], [0], [1], [0, 0, 1, 1], [], []>} : vector<32x128xbf16>, vector<128x128xbf16>, vector<32x128xf32> -> vector<32x128xf32>
    %c0_18 = arith.constant 0 : index
    %c0_19 = arith.constant 0 : index
    %24 = vector.load %arg7[%c0_18, %c0_19] : memref<32x1xf32, #tpu.memory_space<vmem>>, vector<32x1xf32>
    %25 = vector.broadcast %24 : vector<32x1xf32> to vector<32x128xf32>
    %26 = arith.addf %23, %25 : vector<32x128xf32>
    %27 = math.tanh %26 : vector<32x128xf32>
    %28 = arith.truncf %27 : vector<32x128xf32> to vector<32x128xbf16>
    %c0_20 = arith.constant 0 : index
    %c0_21 = arith.constant 0 : index
    %29 = vector.load %arg8[%c0_20, %c0_21] : memref<32x32xbf16, #tpu.memory_space<vmem>>, vector<32x32xbf16>
    %cst_22 = arith.constant dense<0.000000e+00> : vector<32x128xf32>
    %30 = tpu.matmul %29, %28, %cst_22 {dimension_numbers = #tpu.dot_dimension_numbers<[1], [0], [0], [1], [0, 0, 1, 1], [], []>} : vector<32x32xbf16>, vector<32x128xbf16>, vector<32x128xf32> -> vector<32x128xf32>
    %31 = arith.truncf %30 : vector<32x128xf32> to vector<32x128xbf16>
    %cst_23 = arith.constant dense<0.000000e+00> : vector<32x128xf32>
    %32 = tpu.matmul %31, %0, %cst_23 {dimension_numbers = #tpu.dot_dimension_numbers<[1], [0], [0], [1], [0, 0, 1, 1], [], []>} : vector<32x128xbf16>, vector<128x128xbf16>, vector<32x128xf32> -> vector<32x128xf32>
    %c0_24 = arith.constant 0 : index
    %c0_25 = arith.constant 0 : index
    %33 = vector.load %arg9[%c0_24, %c0_25] : memref<32x1xf32, #tpu.memory_space<vmem>>, vector<32x1xf32>
    %34 = vector.broadcast %33 : vector<32x1xf32> to vector<32x128xf32>
    %35 = arith.addf %32, %34 : vector<32x128xf32>
    %36 = math.tanh %35 : vector<32x128xf32>
    %37 = arith.truncf %36 : vector<32x128xf32> to vector<32x128xbf16>
    %c0_26 = arith.constant 0 : index
    %c0_27 = arith.constant 0 : index
    %38 = vector.load %arg10[%c0_26, %c0_27] : memref<128x2xbf16, #tpu.memory_space<vmem>>, vector<128x2xbf16>
    %cst_28 = arith.constant dense<0.000000e+00> : vector<32x2xf32>
    %39 = tpu.matmul %37, %38, %cst_28 {dimension_numbers = #tpu.dot_dimension_numbers<[1], [0], [0], [1], [0, 0, 1, 1], [], []>} : vector<32x128xbf16>, vector<128x2xbf16>, vector<32x2xf32> -> vector<32x2xf32>
    %c0_29 = arith.constant 0 : index
    %c0_30 = arith.constant 0 : index
    %40 = vector.load %arg11[%c0_29, %c0_30] : memref<1x2xf32, #tpu.memory_space<vmem>>, vector<1x2xf32>
    %41 = vector.broadcast %40 : vector<1x2xf32> to vector<32x2xf32>
    %42 = arith.mulf %39, %41 : vector<32x2xf32>
    %c0_31 = arith.constant 0 : index
    %c0_32 = arith.constant 0 : index
    %43 = vector.load %arg12[%c0_31, %c0_32] : memref<2x128xf32, #tpu.memory_space<vmem>>, vector<2x128xf32>
    %44 = vector.extract_strided_slice %43 {offsets = [0, 0], sizes = [1, 128], strides = [1, 1]} : vector<2x128xf32> to vector<1x128xf32>
    %45 = vector.broadcast %44 : vector<1x128xf32> to vector<32x128xf32>
    %46 = arith.addf %36, %45 : vector<32x128xf32>
    %cst_33 = arith.constant dense<0xFF800000> : vector<32xf32>
    %47 = vector.multi_reduction <maximumf>, %46, %cst_33 [1] : vector<32x128xf32> to vector<32xf32>
    %48 = vector.shape_cast %47 : vector<32xf32> to vector<32x1xf32>
    %49 = vector.extract_strided_slice %43 {offsets = [1, 0], sizes = [1, 128], strides = [1, 1]} : vector<2x128xf32> to vector<1x128xf32>
    %50 = vector.broadcast %49 : vector<1x128xf32> to vector<32x128xf32>
    %51 = arith.addf %36, %50 : vector<32x128xf32>
    %cst_34 = arith.constant dense<0xFF800000> : vector<32xf32>
    %52 = vector.multi_reduction <maximumf>, %51, %cst_34 [1] : vector<32x128xf32> to vector<32xf32>
    %53 = vector.shape_cast %52 : vector<32xf32> to vector<32x1xf32>
    %54 = tpu.concatenate %48, %53 in 1 : vector<32x1xf32>, vector<32x1xf32> -> vector<32x2xf32>
    %55 = tpu.transpose %54, [1, 0] : vector<32x2xf32> -> vector<2x32xf32>
    %56 = tpu.transpose %42, [1, 0] : vector<32x2xf32> -> vector<2x32xf32>
    %cst_35 = arith.constant 0.000000e+00 : f32
    %57 = vector.broadcast %cst_35 : f32 to vector<2x64xf32>
    %58 = tpu.concatenate %55, %56, %57 in 1 : vector<2x32xf32>, vector<2x32xf32>, vector<2x64xf32> -> vector<2x128xf32>
    %c0_36 = arith.constant 0 : index
    %c0_37 = arith.constant 0 : index
    %59 = vector.load %arg16[%c0_36, %c0_37] : memref<2x128xf32, #tpu.memory_space<vmem>>, vector<2x128xf32>
    tpu.vector_store %arg16[%c0_36, %c0_37], %58 {strides = array<i32>} : memref<2x128xf32, #tpu.memory_space<vmem>>, vector<2x128xf32>,
    %c0_38 = arith.constant 0 : index
    %c0_39 = arith.constant 0 : index
    %60 = vector.load %arg13[%c0_38, %c0_39] : memref<128x128xf32, #tpu.memory_space<vmem>>, vector<128x128xf32>
    %cst_40 = arith.constant dense<0.000000e+00> : vector<2x128xf32>
    %61 = tpu.matmul %58, %60, %cst_40 {dimension_numbers = #tpu.dot_dimension_numbers<[1], [0], [0], [1], [0, 0, 1, 1], [], []>} : vector<2x128xf32>, vector<128x128xf32>, vector<2x128xf32> -> vector<2x128xf32>
    %c0_41 = arith.constant 0 : index
    %c0_42 = arith.constant 0 : index
    %62 = vector.load %arg14[%c0_41, %c0_42] : memref<1x128xf32, #tpu.memory_space<vmem>>, vector<1x128xf32>
    %63 = vector.broadcast %62 : vector<1x128xf32> to vector<2x128xf32>
    %64 = arith.addf %61, %63 : vector<2x128xf32>
    %c0_43 = arith.constant 0 : index
    %c0_44 = arith.constant 0 : index
    %65 = vector.load %arg15[%c0_43, %c0_44] : memref<2x128xf32, #tpu.memory_space<vmem>>, vector<2x128xf32>
    tpu.vector_store %arg15[%c0_43, %c0_44], %64 {strides = array<i32>} : memref<2x128xf32, #tpu.memory_space<vmem>>, vector<2x128xf32>,
    return
  }
}

</mosaic_0001>

<bundles_post_ra>
// kernel: tpu_custom_call.1
= control target key start
LH: loop header
LB: loop body
LE: loop exit
PB: predicated region body
PF: predicated region fallthrough
CT: control target
= control target key end

     0   :  { %s1885_s0 = inlined_call_operand.vmem [shape: bf16[128,128], index: 0, kind: input, shape index: {}]   ;;  %s1886_s1 = inlined_call_operand.vmem [shape: bf16[4,128], index: 1, kind: input, shape index: {}]   ;;  %s1887_s2 = inlined_call_operand.vmem [shape: bf16[32,4], index: 2, kind: input, shape index: {}]   ;;  %s1888_s3 = inlined_call_operand.vmem [shape: f32[32,1], index: 3, kind: input, shape index: {}]   ;;  %s1889_s4 = inlined_call_operand.vmem [shape: bf16[32,32], index: 4, kind: input, shape index: {}]   ;;  %s1890_s5 = inlined_call_operand.vmem [shape: f32[32,1], index: 5, kind: input, shape index: {}]   ;;  %s1891_s6 = inlined_call_operand.vmem [shape: bf16[32,32], index: 6, kind: input, shape index: {}]   ;;  %s1892_s7 = inlined_call_operand.vmem [shape: f32[32,1], index: 7, kind: input, shape index: {}]   ;;  %s1893_s8 = inlined_call_operand.vmem [shape: bf16[32,32], index: 8, kind: input, shape index: {}]   ;;  %s1894_s9 = inlined_call_operand.vmem [shape: f32[32,1], index: 9, kind: input, shape index: {}]   ;;  %s1895_s10 = inlined_call_operand.vmem [shape: bf16[128,2], index: 10, kind: input, shape index: {}]   ;;  %s1896_s11 = inlined_call_operand.vmem [shape: f32[1,2], index: 11, kind: input, shape index: {}]   ;;  %s1897_s12 = inlined_call_operand.vmem [shape: f32[2,128], index: 12, kind: input, shape index: {}]   ;;  %s1898_s13 = inlined_call_operand.vmem [shape: f32[128,128], index: 13, kind: input, shape index: {}]   ;;  %s1899_s14 = inlined_call_operand.vmem [shape: f32[1,128], index: 14, kind: input, shape index: {}]   ;;  %s1900_s15 = inlined_call_operand.hbm [shape: f32[2,128], index: 15, kind: output, shape index: {0}]   ;;  %s1901_s16 = inlined_call_operand.hbm [shape: f32[2,128], index: 16, kind: output, shape index: {1}]  }
   0x1   :  { %1903 = sst [smem:[#allocation8_spill]] %s1885_s0 }
   0x2   :  { %22 = vsyncpa [#allocation3], 0  ;;  %v71_v0 = vld [vmem:[%s1886_s1] sm:$0x3]  ;;  %vm93_vm0 = vcmask 1041408   ;;  %vm86_vm1 = vcmask 31744  }
   0x3   :  { %v1398_v1 = vld [vmem:[%s1887_s2] sm:$0xff]   ;;  %1388 = vmatprep.subr.msk.bf16.mxu1 %vm93_vm0, %v71_v0  ;;  %v95_v2 = vsel %vm93_vm0, %v71_v0, 0  ;;  %v1399_v3 = vld [vmem:[%s1887_s2 + $0x8] sm:$0xff]   ;;  %s1904_s29 = sld [smem:[#allocation8_spill]] }
   0x4   :  { %1200 = vmatpush3.bf16.msra.mxu1 %v95_v2  ;;  %1201 = vmatprep.mubr.msk.bf16.mxu1 %vm86_vm1, %v1398_v1 }
   0x7   :  { %1202 = vmatmul.mubr.msk.bf16.vlgmr.msra.gmra.mrb[0].mxu1 %vm86_vm1, %v1399_v3 }
   0x9   :  { %v1606_v4 = vld [vmem:[%s1904_s29] sm:$0xff]   ;;  %v1611_v5 = vld [vmem:[%s1904_s29 + $0x8] sm:$0xff]   ;;  %v1619_v6 = vld [vmem:[%s1904_s29 + $0x10] sm:$0xff]  }
   0xa   :  { %1205 = vmatprep.subr.bf16.mxu1 %v1606_v4  ;;  %v1624_v7 = vld [vmem:[%s1904_s29 + $0x18] sm:$0xff]   ;;  %v1631_v8 = vld [vmem:[%s1904_s29 + $0x20] sm:$0xff]   ;;  %v1638_v9 = vld [vmem:[%s1904_s29 + $0x28] sm:$0xff]  }
   0xb   :  { %1206 = vmatpush3.bf16.msra.mxu1 %v1606_v4 }
   0xc   :  { %1207 = vmatprep.subr.bf16.mxu1 %v1611_v5 }
   0xf   :  { %1208 = vmatpush3.bf16.msra.mxu1 %v1611_v5 }
  0x10   :  { %1209 = vmatprep.subr.bf16.mxu1 %v1619_v6 }
  0x13   :  { %1210 = vmatpush3.bf16.msra.mxu1 %v1619_v6 }
  0x14   :  { %1211 = vmatprep.subr.bf16.mxu1 %v1624_v7 }
  0x17   :  { %1212 = vmatpush3.bf16.msra.mxu1 %v1624_v7 }
  0x18   :  { %1213 = vmatprep.subr.bf16.mxu1 %v1631_v8 }
  0x19   :  { %23 = vsyncpa [#allocation5], 0  ;;  %v1647_v10 = vld [vmem:[%s1904_s29 + $0x30] sm:$0xff]   ;;  %v1655_v11 = vld [vmem:[%s1904_s29 + $0x38] sm:$0xff]   ;;  %v1502_v14 = vmov 0   ;;  %vm289_vm2 = vcmask 261120  }
  0x1a   :  { %v148_v12 = vld [vmem:[%s1888_s3] sm:$0xff]  ;;  %v150_v13 = vld [vmem:[%s1888_s3 + $0x10] sm:$0xff]  ;;  %1396 = vset.pattern.permute.xlu0 %v1502_v14  ;;  %1397 = vset.pattern.permute.xlu1 %v1502_v14  ;;  %v149_v15 = vld [vmem:[%s1888_s3 + $0x8] sm:$0xff]  ;;  %s1504_s23 = smov 32   ;;  %vm883_vm3 = vcmask 7168   ;;  %vm1505_vm4 = vmmov 0  }
  0x1b   :  { %1214 = vmatpush3.bf16.msra.mxu1 %v1631_v8  ;;  %154 = vperm.xlu0 %1396, %v148_v12   ;;  %v151_v16 = vld [vmem:[%s1888_s3 + $0x18] sm:$0xff]  ;;  %v347_v17 = vld [vmem:[%s1890_s5] sm:$0xff]  ;;  %v348_v18 = vld [vmem:[%s1890_s5 + $0x8] sm:$0xff]  ;;  %vm957_vm5 = vcmask 523264  }
  0x1c   :  { %1215 = vmatprep.subr.bf16.mxu1 %v1638_v9  ;;  %164 = vperm.xlu1 %1397, %v150_v13   ;;  %v349_v19 = vld [vmem:[%s1890_s5 + $0x10] sm:$0xff]  ;;  %v350_v20 = vld [vmem:[%s1890_s5 + $0x18] sm:$0xff]  ;;  %v497_v21 = vld [vmem:[%s1892_s7] sm:$0xff] }
  0x1d   :  { %v498_v22 = vld [vmem:[%s1892_s7 + $0x8] sm:$0xff]  ;;  %v499_v23 = vld [vmem:[%s1892_s7 + $0x10] sm:$0xff]  ;;  %v500_v24 = vld [vmem:[%s1892_s7 + $0x18] sm:$0xff] }
  0x1e   :  { %v647_v25 = vld [vmem:[%s1894_s9] sm:$0xff]  ;;  %v648_v26 = vld [vmem:[%s1894_s9 + $0x8] sm:$0xff]  ;;  %v649_v27 = vld [vmem:[%s1894_s9 + $0x10] sm:$0xff] }
  0x1f   :  { %1216 = vmatpush3.bf16.msra.mxu1 %v1638_v9  ;;  %159 = vperm.xlu0 %1396, %v149_v15   ;;  %v650_v28 = vld [vmem:[%s1894_s9 + $0x18] sm:$0xff]  ;;  %v1408_v35 = vld [vmem:[%s1889_s4] sm:$0xff]   ;;  %v1409_v54 = vld [vmem:[%s1889_s4 + $0x8] sm:$0xff]  }
  0x20   :  { %1217 = vmatprep.subr.bf16.mxu1 %v1647_v10  ;;  %169 = vperm.xlu1 %1397, %v151_v16   ;;  %v1410_v61 = vld [vmem:[%s1891_s6] sm:$0xff]  }
  0x21   :  { %1229 = vmatprep.mubr.msk.bf16.mxu0 %vm289_vm2, %v1408_v35 }
  0x23   :  { %1218 = vmatpush3.bf16.msra.mxu1 %v1647_v10  ;;  %353 = vperm.xlu0 %1396, %v347_v17  }
  0x24   :  { %1219 = vmatprep.subr.bf16.mxu1 %v1655_v11  ;;  %358 = vperm.xlu1 %1397, %v348_v18  }
  0x27   :  { %1220 = vmatpush3.bf16.msra.mxu1 %v1655_v11  ;;  %363 = vperm.xlu0 %1396, %v349_v19  }
  0x28   :  { %368 = vperm.xlu1 %1397, %v350_v20  }
  0x2b   :  { %503 = vperm.xlu0 %1396, %v497_v21  }
  0x2c   :  { %508 = vperm.xlu1 %1397, %v498_v22  }
  0x2f   :  { %513 = vperm.xlu0 %1396, %v499_v23  }
  0x30   :  { %518 = vperm.xlu1 %1397, %v500_v24   ;;  %v1411_v24 = vld [vmem:[%s1891_s6 + $0x8] sm:$0xff]  }
  0x33   :  { %653 = vperm.xlu0 %1396, %v647_v25  }
  0x34   :  { %658 = vperm.xlu1 %1397, %v648_v26  }
  0x37   :  { %663 = vperm.xlu0 %1396, %v649_v27  }
  0x38   :  { %668 = vperm.xlu1 %1397, %v650_v28  }
  0x9a   :  { %v155_v37 = vpop.permute.xlu0 %154 }
  0x9b   :  { %v165_v36 = vpop.permute.xlu1 %164 }
  0x9e   :  { %v160_v44 = vpop.permute.xlu0 %159 }
  0x9f   :  { %v170_v41 = vpop.permute.xlu1 %169 }
  0xa2   :  { %v354_v62 = vpop.permute.xlu0 %353 }
  0xa3   :  { %v359_v63 = vpop.permute.xlu1 %358 }
  0xa6   :  { %v364_v0 = vpop.permute.xlu0 %363 }
  0xa7   :  { %v369_v12 = vpop.permute.xlu1 %368 }
  0xda   :  { %v1203_v29 = vpop.f32.mrb[0].mxu1 }
  0xdb   :  { %v131_v30 = vpop.f32.mrb[1].mxu1 }
  0xdc   :  { %v1204_v31 = vpop.f32.mrb[2].mxu1 }
  0xdd   :  { %v147_v32 = vpack.c.bf16 %v1204_v31, %v1203_v29  ;;  %v134_v33 = vpop.f32.mrb[3].mxu1  ;;  %v1412_v31 = vld [vmem:[%s1893_s8] sm:$0xff]  }
  0xde   :  { %v146_v34 = vpack.c.bf16 %v134_v33, %v131_v30  ;;  %v509_v33 = vpop.permute.xlu1 %508 }
  0xe0   :  { %1221 = vmatprep.mubr.bf16.mxu1 %v146_v34 }
  0xe1   :  { %1222 = vmatmul.mubr.bf16.vlgmr.msra.gmra.mrb[4].mxu1 %v147_v32  ;;  %v504_v32 = vpop.permute.xlu0 %503 }
  0xe2   :  { %1257 = vmatprep.mubr.msk.bf16.mxu1 %vm289_vm2, %v1410_v61 }
  0xe5   :  { %v514_v34 = vpop.permute.xlu0 %513 }
 0x1b4   :  { %v1223_v38 = vpop.f32.mrb[4].mxu1 }
 0x1b5   :  { %v263_v39 = vadd.f32 %v1223_v38, %v165_v36  ;;  %v254_v40 = vpop.f32.mrb[5].mxu1  ;;  %v519_v38 = vpop.permute.xlu1 %518 }
 0x1b6   :  { %v255_v42 = vadd.f32 %v254_v40, %v155_v37  ;;  %v1224_v43 = vpop.f32.mrb[6].mxu1 }
 0x1b7   :  { %1422 = vtanh.f32 %v263_v39  ;;  %v266_v45 = vadd.f32 %v1224_v43, %v170_v41  ;;  %v257_v46 = vpop.f32.mrb[7].mxu1 }
 0x1b8   :  { %1424 = vtanh.f32 %v255_v42  ;;  %v258_v47 = vadd.f32 %v257_v46, %v160_v44 }
 0x1b9   :  { %1426 = vtanh.f32 %v266_v45 }
 0x1ba   :  { %1428 = vtanh.f32 %v258_v47 }
 0x1c1   :  { %v1423_v48 = vpop.eup %1422 }
 0x1c2   :  { %v1425_v49 = vpop.eup %1424 }
 0x1c3   :  { %v1427_v50 = vpop.eup %1426 }
 0x1c4   :  { %v1429_v51 = vpop.eup %1428  ;;  %v274_v52 = vpack.c.bf16 %v1427_v50, %v1423_v48  ;;  %v1413_v50 = vld [vmem:[%s1893_s8 + $0x8] sm:$0xff]  }
 0x1c5   :  { %v273_v53 = vpack.c.bf16 %v1429_v51, %v1425_v49 }
 0x1c7   :  { %1225 = vmatprep.subr.bf16.mxu0 %v273_v53 }
 0x1c8   :  { %1226 = vmatpush3.bf16.msra.mxu0 %v273_v53  ;;  %v1418_v53 = vld [vmem:[%s1895_s10 + $0x20] sm:$0xff]  }
 0x1c9   :  { %1227 = vmatprep.subr.bf16.mxu0 %v274_v52 }
 0x1cc   :  { %1228 = vmatpush3.bf16.msra.mxu0 %v274_v52  ;;  %v1417_v52 = vld [vmem:[%s1895_s10 + $0x18] sm:$0xff]  }
 0x1cd   :  { %1233 = vmatprep.subr.bf16.mxu0 %v1606_v4 }
 0x1cf   :  { %1230 = vmatmul.mubr.msk.bf16.vlgmr.msra.gmra.mrb[0].mxu0 %vm289_vm2, %v1409_v54  ;;  %v1419_v54 = vld [vmem:[%s1895_s10 + $0x28] sm:$0xff]  }
 0x1d0   :  { %1234 = vmatpush3.bf16.msra.mxu0 %v1606_v4 }
 0x1d1   :  { %1235 = vmatprep.subr.bf16.mxu0 %v1611_v5 }
 0x1d4   :  { %1236 = vmatpush3.bf16.msra.mxu0 %v1611_v5 }
 0x1d5   :  { %1237 = vmatprep.subr.bf16.mxu0 %v1619_v6 }
 0x1d8   :  { %1238 = vmatpush3.bf16.msra.mxu0 %v1619_v6 }
 0x1d9   :  { %1239 = vmatprep.subr.bf16.mxu0 %v1624_v7 }
 0x1dc   :  { %1240 = vmatpush3.bf16.msra.mxu0 %v1624_v7 }
 0x1dd   :  { %1241 = vmatprep.subr.bf16.mxu0 %v1631_v8 }
 0x1e0   :  { %1242 = vmatpush3.bf16.msra.mxu0 %v1631_v8 }
 0x1e1   :  { %1243 = vmatprep.subr.bf16.mxu0 %v1638_v9 }
 0x1e4   :  { %1244 = vmatpush3.bf16.msra.mxu0 %v1638_v9 }
 0x1e5   :  { %1245 = vmatprep.subr.bf16.mxu0 %v1647_v10 }
 0x1e8   :  { %1246 = vmatpush3.bf16.msra.mxu0 %v1647_v10 }
 0x1e9   :  { %1247 = vmatprep.subr.bf16.mxu0 %v1655_v11 }
 0x1ec   :  { %1248 = vmatpush3.bf16.msra.mxu0 %v1655_v11 }
 0x2a2   :  { %v1231_v55 = vpop.f32.mrb[0].mxu0 }
 0x2a3   :  { %v330_v56 = vpop.f32.mrb[1].mxu0 }
 0x2a4   :  { %v1232_v57 = vpop.f32.mrb[2].mxu0 }
 0x2a5   :  { %v346_v58 = vpack.c.bf16 %v1232_v57, %v1231_v55  ;;  %v333_v59 = vpop.f32.mrb[3].mxu0  ;;  %v1420_v55 = vld [vmem:[%s1895_s10 + $0x30] sm:$0xff]   ;;  %v654_v57 = vpop.permute.xlu0 %653 }
 0x2a6   :  { %v345_v60 = vpack.c.bf16 %v333_v59, %v330_v56  ;;  %v1421_v56 = vld [vmem:[%s1895_s10 + $0x38] sm:$0xff]   ;;  %v851_v59 = vlaneseq }
 0x2a8   :  { %1249 = vmatprep.mubr.bf16.mxu0 %v345_v60 }
 0x2a9   :  { %1250 = vmatmul.mubr.bf16.vlgmr.msra.gmra.mrb[4].mxu0 %v346_v58  ;;  %v659_v58 = vpop.permute.xlu1 %658  ;;  %v664_v60 = vpop.permute.xlu0 %663 }
 0x2aa   :  { %1285 = vmatprep.mubr.msk.bf16.mxu0 %vm289_vm2, %v1412_v31 }
 0x37c   :  { %v1251_v1 = vpop.f32.mrb[4].mxu0 }
 0x37d   :  { %v414_v2 = vadd.f32 %v1251_v1, %v364_v0  ;;  %v405_v3 = vpop.f32.mrb[5].mxu0  ;;  %v669_v0 = vpop.permute.xlu1 %668 }
 0x37e   :  { %v406_v13 = vadd.f32 %v405_v3, %v354_v62  ;;  %v1252_v14 = vpop.f32.mrb[6].mxu0  ;;  %v852_v3 = vshrl.u32 %v851_v59, 7  ;;  %v973_v59 = vld [vmem:[%s1898_s13 + $0x68] sm:$0xff] }
 0x37f   :  { %1430 = vtanh.f32 %v414_v2  ;;  %v417_v15 = vadd.f32 %v1252_v14, %v369_v12  ;;  %v408_v16 = vpop.f32.mrb[7].mxu0 }
 0x380   :  { %1432 = vtanh.f32 %v406_v13  ;;  %v409_v17 = vadd.f32 %v408_v16, %v359_v63  ;;  %v853_v16 = vsub.s32 0, %v852_v3 }
 0x381   :  { %1434 = vtanh.f32 %v417_v15  ;;  %v869_v15 = vsub.s32 1, %v852_v3 }
 0x382   :  { %1436 = vtanh.f32 %v409_v17  ;;  %v850_v17 = vld [vmem:[%s1897_s12] sm:$0x3] }
 0x389   :  { %v1431_v18 = vpop.eup %1430 }
 0x38a   :  { %v1433_v19 = vpop.eup %1432 }
 0x38b   :  { %v1435_v20 = vpop.eup %1434 }
 0x38c   :  { %v1437_v21 = vpop.eup %1436  ;;  %v425_v22 = vpack.c.bf16 %v1435_v20, %v1431_v18  ;;  %v870_v18 = vrot.slane %v850_v17, %v869_v15 }
 0x38d   :  { %v424_v23 = vpack.c.bf16 %v1437_v21, %v1433_v19  ;;  %v854_v19 = vrot.slane %v850_v17, %v853_v16 }
 0x38f   :  { %1253 = vmatprep.subr.bf16.mxu1 %v424_v23 }
 0x390   :  { %1254 = vmatpush3.bf16.msra.mxu1 %v424_v23 }
 0x391   :  { %1255 = vmatprep.subr.bf16.mxu1 %v425_v22 }
 0x394   :  { %1256 = vmatpush3.bf16.msra.mxu1 %v425_v22 }
 0x395   :  { %1261 = vmatprep.subr.bf16.mxu1 %v1606_v4 }
 0x397   :  { %1258 = vmatmul.mubr.msk.bf16.vlgmr.msra.gmra.mrb[8].mxu1 %vm289_vm2, %v1411_v24 }
 0x398   :  { %1262 = vmatpush3.bf16.msra.mxu1 %v1606_v4 }
 0x399   :  { %1263 = vmatprep.subr.bf16.mxu1 %v1611_v5 }
 0x39c   :  { %1264 = vmatpush3.bf16.msra.mxu1 %v1611_v5 }
 0x39d   :  { %1265 = vmatprep.subr.bf16.mxu1 %v1619_v6 }
 0x3a0   :  { %1266 = vmatpush3.bf16.msra.mxu1 %v1619_v6 }
 0x3a1   :  { %1267 = vmatprep.subr.bf16.mxu1 %v1624_v7 }
 0x3a4   :  { %1268 = vmatpush3.bf16.msra.mxu1 %v1624_v7 }
 0x3a5   :  { %1269 = vmatprep.subr.bf16.mxu1 %v1631_v8 }
 0x3a8   :  { %1270 = vmatpush3.bf16.msra.mxu1 %v1631_v8 }
 0x3a9   :  { %1271 = vmatprep.subr.bf16.mxu1 %v1638_v9 }
 0x3ac   :  { %1272 = vmatpush3.bf16.msra.mxu1 %v1638_v9 }
 0x3ad   :  { %1273 = vmatprep.subr.bf16.mxu1 %v1647_v10 }
 0x3b0   :  { %1274 = vmatpush3.bf16.msra.mxu1 %v1647_v10 }
 0x3b1   :  { %1275 = vmatprep.subr.bf16.mxu1 %v1655_v11 }
 0x3b4   :  { %1276 = vmatpush3.bf16.msra.mxu1 %v1655_v11 }
 0x46a   :  { %v1259_v25 = vpop.f32.mrb[8].mxu1 }
 0x46b   :  { %v480_v26 = vpop.f32.mrb[9].mxu1 }
 0x46c   :  { %v1260_v27 = vpop.f32.mrb[10].mxu1 }
 0x46d   :  { %v496_v28 = vpack.c.bf16 %v1260_v27, %v1259_v25  ;;  %v483_v29 = vpop.f32.mrb[11].mxu1 }
 0x46e   :  { %v495_v30 = vpack.c.bf16 %v483_v29, %v480_v26 }
 0x470   :  { %1277 = vmatprep.mubr.bf16.mxu1 %v495_v30 }
 0x471   :  { %1278 = vmatmul.mubr.bf16.vlgmr.msra.gmra.mrb[12].mxu1 %v496_v28 }
 0x544   :  { %v1279_v35 = vpop.f32.mrb[12].mxu1 }
 0x545   :  { %v564_v36 = vadd.f32 %v1279_v35, %v514_v34  ;;  %v555_v37 = vpop.f32.mrb[13].mxu1  ;;  %v1114_v34 = vld [vmem:[%s1896_s11] ss:$0 sm:$0xff] }
 0x546   :  { %v556_v39 = vadd.f32 %v555_v37, %v504_v32  ;;  %v1280_v40 = vpop.f32.mrb[14].mxu1 }
 0x547   :  { %1438 = vtanh.f32 %v564_v36  ;;  %v567_v41 = vadd.f32 %v1280_v40, %v519_v38  ;;  %v558_v42 = vpop.f32.mrb[15].mxu1 }
 0x548   :  { %1440 = vtanh.f32 %v556_v39  ;;  %v559_v43 = vadd.f32 %v558_v42, %v509_v33 }
 0x549   :  { %1442 = vtanh.f32 %v567_v41 }
 0x54a   :  { %1444 = vtanh.f32 %v559_v43 }
 0x551   :  { %v1439_v44 = vpop.eup %1438 }
 0x552   :  { %v1441_v45 = vpop.eup %1440 }
 0x553   :  { %v1443_v46 = vpop.eup %1442 }
 0x554   :  { %v1445_v47 = vpop.eup %1444  ;;  %v575_v48 = vpack.c.bf16 %v1443_v46, %v1439_v44  ;;  %v960_v44 = vld [vmem:[%s1898_s13] sm:$0xff]  ;;  %v962_v46 = vld [vmem:[%s1898_s13 + $0x10] sm:$0xff] }
 0x555   :  { %v574_v49 = vpack.c.bf16 %v1445_v47, %v1441_v45  ;;  %v961_v45 = vld [vmem:[%s1898_s13 + $0x8] sm:$0xff]  ;;  %v1503_v47 = vmov 0.0|0.0  }
 0x557   :  { %1281 = vmatprep.subr.bf16.mxu0 %v574_v49 }
 0x558   :  { %1282 = vmatpush3.bf16.msra.mxu0 %v574_v49  ;;  %v963_v49 = vld [vmem:[%s1898_s13 + $0x18] sm:$0xff] }
 0x559   :  { %1283 = vmatprep.subr.bf16.mxu0 %v575_v48 }
 0x55c   :  { %1284 = vmatpush3.bf16.msra.mxu0 %v575_v48  ;;  %v1365_v48 = vpack.c.bf16 %v961_v45, %v960_v44 }
 0x55d   :  { %1289 = vmatprep.subr.bf16.mxu0 %v1606_v4 }
 0x55f   :  { %1286 = vmatmul.mubr.msk.bf16.vlgmr.msra.gmra.mrb[8].mxu0 %vm289_vm2, %v1413_v50 }
 0x560   :  { %1290 = vmatpush3.bf16.msra.mxu0 %v1606_v4  ;;  %v1414_v4 = vld [vmem:[%s1895_s10] sm:$0xff]  }
 0x561   :  { %1291 = vmatprep.subr.bf16.mxu0 %v1611_v5  ;;  %1309 = vmatprep.subr.bf16.mxu1 %v1414_v4 }
 0x562   :  { %1310 = vmatpush3.bf16.msra.mxu1 %v1414_v4  ;;  %v1368_v4 = vpack.c.bf16 %v963_v49, %v962_v46 }
 0x564   :  { %1292 = vmatpush3.bf16.msra.mxu0 %v1611_v5  ;;  %v1415_v5 = vld [vmem:[%s1895_s10 + $0x8] sm:$0xff]  }
 0x565   :  { %1293 = vmatprep.subr.bf16.mxu0 %v1619_v6  ;;  %1311 = vmatprep.subr.bf16.mxu1 %v1415_v5 }
 0x566   :  { %1312 = vmatpush3.bf16.msra.mxu1 %v1415_v5  ;;  %v964_v5 = vld [vmem:[%s1898_s13 + $0x20] sm:$0xff] }
 0x568   :  { %1294 = vmatpush3.bf16.msra.mxu0 %v1619_v6  ;;  %v1416_v6 = vld [vmem:[%s1895_s10 + $0x10] sm:$0xff]  }
 0x569   :  { %1295 = vmatprep.subr.bf16.mxu0 %v1624_v7  ;;  %1313 = vmatprep.subr.bf16.mxu1 %v1416_v6 }
 0x56a   :  { %1314 = vmatpush3.bf16.msra.mxu1 %v1416_v6  ;;  %v965_v6 = vld [vmem:[%s1898_s13 + $0x28] sm:$0xff] }
 0x56b   :  { %1315 = vmatprep.subr.bf16.mxu1 %v1417_v52 }
 0x56c   :  { %1296 = vmatpush3.bf16.msra.mxu0 %v1624_v7 }
 0x56d   :  { %1297 = vmatprep.subr.bf16.mxu0 %v1631_v8 }
 0x56e   :  { %1316 = vmatpush3.bf16.msra.mxu1 %v1417_v52  ;;  %v969_v52 = vld [vmem:[%s1898_s13 + $0x48] sm:$0xff] }
 0x56f   :  { %1317 = vmatprep.subr.bf16.mxu1 %v1418_v53 }
 0x570   :  { %1298 = vmatpush3.bf16.msra.mxu0 %v1631_v8 }
 0x571   :  { %1299 = vmatprep.subr.bf16.mxu0 %v1638_v9 }
 0x572   :  { %1318 = vmatpush3.bf16.msra.mxu1 %v1418_v53 }
 0x573   :  { %1319 = vmatprep.subr.bf16.mxu1 %v1419_v54 }
 0x574   :  { %1300 = vmatpush3.bf16.msra.mxu0 %v1638_v9 }
 0x575   :  { %1301 = vmatprep.subr.bf16.mxu0 %v1647_v10 }
 0x576   :  { %1320 = vmatpush3.bf16.msra.mxu1 %v1419_v54 }
 0x577   :  { %1321 = vmatprep.subr.bf16.mxu1 %v1420_v55 }
 0x578   :  { %1302 = vmatpush3.bf16.msra.mxu0 %v1647_v10 }
 0x579   :  { %1303 = vmatprep.subr.bf16.mxu0 %v1655_v11 }
 0x57a   :  { %1322 = vmatpush3.bf16.msra.mxu1 %v1420_v55  ;;  %v970_v55 = vld [vmem:[%s1898_s13 + $0x50] sm:$0xff] }
 0x57b   :  { %1323 = vmatprep.subr.bf16.mxu1 %v1421_v56 }
 0x57c   :  { %1304 = vmatpush3.bf16.msra.mxu0 %v1655_v11 }
 0x57d   :  { %1364 = vmatprep.subr.bf16.mxu0 %v1503_v47 }
 0x57e   :  { %1324 = vmatpush3.bf16.msra.mxu1 %v1421_v56  ;;  %v971_v56 = vld [vmem:[%s1898_s13 + $0x58] sm:$0xff] }
 0x632   :  { %v1287_v7 = vpop.f32.mrb[8].mxu0 }
 0x633   :  { %v630_v8 = vpop.f32.mrb[9].mxu0 }
 0x634   :  { %v1288_v9 = vpop.f32.mrb[10].mxu0 }
 0x635   :  { %v646_v10 = vpack.c.bf16 %v1288_v9, %v1287_v7  ;;  %v633_v11 = vpop.f32.mrb[11].mxu0  ;;  %v1371_v7 = vpack.c.bf16 %v965_v6, %v964_v5  ;;  %v967_v9 = vld [vmem:[%s1898_s13 + $0x38] sm:$0xff] }
 0x636   :  { %v645_v51 = vpack.c.bf16 %v633_v11, %v630_v8  ;;  %v966_v8 = vld [vmem:[%s1898_s13 + $0x30] sm:$0xff] }
 0x637   :  { %v1374_v11 = vpack.c.bf16 %v967_v9, %v966_v8 }
 0x638   :  { %1305 = vmatprep.mubr.bf16.mxu0 %v645_v51  ;;  %v968_v51 = vld [vmem:[%s1898_s13 + $0x40] sm:$0xff] }
 0x639   :  { %1306 = vmatmul.mubr.bf16.vlgmr.msra.gmra.mrb[12].mxu0 %v646_v10  ;;  %v1377_v54 = vpack.c.bf16 %v969_v52, %v968_v51 }
 0x63a   :  { %1366 = vmatpush3.bf16.msra.mxu0 %v1365_v48 }
 0x63b   :  { %1367 = vmatprep.subr.bf16.mxu0 %v1503_v47 }
 0x63e   :  { %1369 = vmatpush3.bf16.msra.mxu0 %v1368_v4 }
 0x63f   :  { %1370 = vmatprep.subr.bf16.mxu0 %v1503_v47 }
 0x642   :  { %1372 = vmatpush3.bf16.msra.mxu0 %v1371_v7 }
 0x643   :  { %1373 = vmatprep.subr.bf16.mxu0 %v1503_v47 }
 0x646   :  { %1375 = vmatpush3.bf16.msra.mxu0 %v1374_v11 }
 0x647   :  { %1376 = vmatprep.subr.bf16.mxu0 %v1503_v47 }
 0x64a   :  { %1378 = vmatpush3.bf16.msra.mxu0 %v1377_v54 }
 0x64b   :  { %1379 = vmatprep.subr.bf16.mxu0 %v1503_v47 }
 0x70c   :  { %v1307_v61 = vpop.f32.mrb[12].mxu0 }
 0x70d   :  { %v714_v62 = vadd.f32 %v1307_v61, %v664_v60  ;;  %v705_v63 = vpop.f32.mrb[13].mxu0  ;;  %v974_v61 = vld [vmem:[%s1898_s13 + $0x70] sm:$0xff] }
 0x70e   :  { %v706_v1 = vadd.f32 %v705_v63, %v654_v57  ;;  %v1308_v2 = vpop.f32.mrb[14].mxu0  ;;  %v1380_v57 = vpack.c.bf16 %v971_v56, %v970_v55 }
 0x70f   :  { %1446 = vtanh.f32 %v714_v62  ;;  %v717_v12 = vadd.f32 %v1308_v2, %v669_v0  ;;  %v708_v13 = vpop.f32.mrb[15].mxu0  ;;  %v975_v62 = vld [vmem:[%s1898_s13 + $0x78] sm:$0xff] }
 0x710   :  { %1448 = vtanh.f32 %v706_v1  ;;  %v709_v14 = vadd.f32 %v708_v13, %v659_v58  ;;  %v972_v58 = vld [vmem:[%s1898_s13 + $0x60] sm:$0xff]  ;;  %1381 = vmatpush3.bf16.msra.mxu0 %v1380_v57  ;;  %v1386_v0 = vpack.c.bf16 %v975_v62, %v974_v61  ;;  %v1506_v13 = vmov 0.0   ;;  %s1507_s13 = smov [#allocation4]  }
 0x711   :  { %1450 = vtanh.f32 %v717_v12  ;;  %v1383_v60 = vpack.c.bf16 %v973_v59, %v972_v58  ;;  %1382 = vmatprep.subr.bf16.mxu0 %v1503_v47  ;;  %1361 = vmatprep.mubr.msk.f32.mxu0 %vm1505_vm4, %v1506_v13  ;;  %s1070_s1 = sshll.u32 %s1507_s13, 4  ;;  %s1071_s1 = int_to_ptr.vmem [resolvable:$true] %s1070_s1 }
 0x712   :  { %1452 = vtanh.f32 %v709_v14  ;;  %s1454_s8 = scalar_lea.vmem %s1071_s1, 32  ;;  %p1459_p1 = scmp.lt.s32.totalorder %s1071_s1, %s1071_s1 }
 0x713   :  { %p1455_p0 = scmp.ne.s32.totalorder %s1071_s1, %s1454_s8  ;;  %p1460_p2 = scmp.lt.s32.totalorder %s1454_s8, %s1454_s8 }
 0x714   :  { %1384 = vmatpush3.bf16.msra.mxu0 %v1383_v60 }
 0x715   :  { %1385 = vmatprep.subr.bf16.mxu0 %v1503_v47  ;;  %p1461_p3 = por %p1460_p2, %p1459_p1 }
 0x717   :  { %p1462_p4 = pnand %p1461_p3, %p1455_p0 }
 0x718   :  { %1387 = vmatpush3.bf16.msra.mxu0 %v1386_v0 }
 0x719   :  { %v1447_v20 = vpop.eup %1446 }
 0x71a   :  { %v1449_v21 = vpop.eup %1448  ;;  %v873_v22 = vadd.f32 %v1447_v20, %v870_v18  ;;  %v857_v23 = vadd.f32 %v1447_v20, %v854_v19 }
 0x71b   :  { %v1451_v24 = vpop.eup %1450  ;;  %v871_v28 = vadd.f32 %v1449_v21, %v870_v18  ;;  %v855_v29 = vadd.f32 %v1449_v21, %v854_v19 }
 0x71c   :  { %v1453_v25 = vpop.eup %1452  ;;  %879 = vmax.xlane.f32.xlu0 %v873_v22  ;;  %863 = vmax.xlane.f32.xlu1 %v857_v23  ;;  %v725_v26 = vpack.c.bf16 %v1451_v24, %v1447_v20  ;;  %v858_v30 = vadd.f32 %v1451_v24, %v854_v19  ;;  %v874_v33 = vadd.f32 %v1451_v24, %v870_v18 }
 0x71d   :  { %v724_v27 = vpack.c.bf16 %v1453_v25, %v1449_v21  ;;  %v856_v31 = vadd.f32 %v1453_v25, %v854_v19  ;;  %v872_v32 = vadd.f32 %v1453_v25, %v870_v18 }
 0x71f   :  { %1325 = vmatprep.mubr.bf16.mxu1 %v724_v27 }
 0x720   :  { %875 = vmax.xlane.f32.xlu1 %v871_v28  ;;  %859 = vmax.xlane.f32.xlu0 %v855_v29 }
 0x721   :  { %1326 = vmatmul.mubr.bf16.vlgmr.msra.gmra.mrb[16].mxu1 %v725_v26 }
 0x724   :  { %865 = vmax.xlane.f32.xlu1 %v858_v30  ;;  %861 = vmax.xlane.f32.xlu0 %v856_v31 }
 0x728   :  { %877 = vmax.xlane.f32.xlu0 %v872_v32 }
 0x72c   :  { %881 = vmax.xlane.f32.xlu0 %v874_v33 }
 0x7a9   :  { %v864_v43 = vpop.xlane.xlu1 %863  ;;  %v880_v63 = vpop.xlane.xlu0 %879 }
 0x7aa   :  { %v886_v15 = vsel %vm883_vm3, %v864_v43, %v880_v63 }
 0x7ad   :  { %v876_v50 = vpop.xlane.xlu1 %875  ;;  %v860_v1 = vpop.xlane.xlu0 %859 }
 0x7ae   :  { %v884_v3 = vsel %vm883_vm3, %v860_v1, %v876_v50 }
 0x7b1   :  { %v866_v10 = vpop.xlane.xlu1 %865  ;;  %v862_v2 = vpop.xlane.xlu0 %861 }
 0x7b5   :  { %v878_v12 = vpop.xlane.xlu0 %877 }
 0x7b6   :  { %v885_v14 = vsel %vm883_vm3, %v862_v2, %v878_v12 }
 0x7b9   :  { %v882_v16 = vpop.xlane.xlu0 %881 }
 0x7ba   :  { %v887_v17 = vsel %vm883_vm3, %v866_v10, %v882_v16 }
 0x7f4   :  { %v1327_v35 = vpop.f32.mrb[16].mxu1 }
 0x7f5   :  { %v824_v36 = vpop.f32.mrb[17].mxu1  ;;  %v848_v41 = vmul.f32 %v1327_v35, %v1114_v34 }
 0x7f6   :  { %v846_v37 = vmul.f32 %v1114_v34, %v824_v36  ;;  %v1328_v38 = vpop.f32.mrb[18].mxu1 }
 0x7f7   :  { %v827_v39 = vpop.f32.mrb[19].mxu1  ;;  %v849_v42 = vmul.f32 %v1328_v38, %v1114_v34 }
 0x7f8   :  { %920 = vxpose.xlu1.b32.start [1/4] (short) (narrow) %v846_v37, 8  ;;  %v847_v40 = vmul.f32 %v1114_v34, %v827_v39 }
 0x7fc   :  { %921 = vxpose.xlu1.b32.cont [2/4] (short) (narrow) %v847_v40, 8 }
 0x800   :  { %922 = vxpose.xlu1.b32.cont [3/4] (short) (narrow) %v848_v41, 8 }
 0x804   :  { %923 = vxpose.xlu1.b32.end [4/4] (short) (narrow) %v849_v42, 8 }
 0x878   :  { %v936_v53 = vpop.trf.xlu1 }
 0x879   :  { %953 = vrot.lane.b32.xlu0 %v936_v53, %s1504_s23 }
 0x897   :  { %888 = vxpose.xlu0.b32.start [1/4] (short) (narrow) %v884_v3, 8 }
 0x89b   :  { %889 = vxpose.xlu0.b32.cont [2/4] (short) (narrow) %v885_v14, 8 }
 0x89f   :  { %890 = vxpose.xlu0.b32.cont [3/4] (short) (narrow) %v886_v15, 8 }
 0x8a3   :  { %891 = vxpose.xlu0.b32.end [4/4] (short) (narrow) %v887_v17, 8 }
 0x8eb   :  { %v954_v18 = vpop.permute.xlu0 %953 }
 0x917   :  { %v904_v19 = vpop.trf.xlu0 }
 0x918   :  { %v956_v20 = vsel %vm289_vm2, %v904_v19, %v954_v18 }
 0x919   :  { %1362 = vmatmul.mubr.msk.f32.vlgmr.msra.gmra.mrb[16].mxu0 %vm957_vm5, %v956_v20  ;;  %v958_v21 = vsel %vm957_vm5, %v956_v20, 0.0 }
 0x91a   :  { %959 = vst [vmem:[#allocation4] sm:$0x3] %v958_v21 }
 0x91b   :  { %1465 = shalt.err (!%p1462_p4)
}
 0x91c   :  { %s1466_s29 = scalar_lea.hbm %s1901_s16, 32 }
 0x91d   :  { %p1467_p5 = scmp.ne.s32.totalorder %s1901_s16, %s1466_s29  ;;  %p1470_p6 = scmp.lt.u32.totalorder %s1466_s29, %s1901_s16 }
 0x91f   :  { %p1472_p7 = pnand %p1470_p6, %p1467_p5 }
 0x921   :  { %1475 = shalt.err (!%p1472_p7)
}
 0x922   :  { %1073 = dma.vmem_to_hbm [thread:$0]  %s1071_s1, 32, %s1901_s16, [#allocation5]   ;;  %v1115_v22 = vld [vmem:[%s1899_s14] ss:$0 sm:$0xff] }
 0x923   :  { %s1508_s7 = smov [#allocation2]  }
 0x924   :  { %s1060_s23 = sshll.u32 %s1508_s7, 4  ;;  %s1061_s23 = int_to_ptr.vmem [resolvable:$true] %s1060_s23 }
 0x925   :  { %s1476_s9 = scalar_lea.vmem %s1061_s23, 32  ;;  %p1481_p9 = scmp.lt.s32.totalorder %s1061_s23, %s1061_s23 }
 0x926   :  { %p1477_p8 = scmp.ne.s32.totalorder %s1061_s23, %s1476_s9  ;;  %p1482_p10 = scmp.lt.s32.totalorder %s1476_s9, %s1476_s9 }
 0x928   :  { %p1483_p11 = por %p1482_p10, %p1481_p9 }
 0x92a   :  { %p1484_p12 = pnand %p1483_p11, %p1477_p8 }
 0x9ec   :  { %v1049_v23 = vpop.f32.mrb[16].mxu0 }
 0x9ed   :  { %v1050_v24 = vadd.f32 %v1115_v22, %v1049_v23  ;;  %v1363_v25 = vpop.f32.mrb[17].mxu0 }
 0x9ef   :  { %1053 = vst [vmem:[#allocation2] sm:$0x3] %v1050_v24 }
 0x9f0   :  { %1487 = shalt.err (!%p1484_p12)
}
 0x9f1   :  { %s1488_s10 = scalar_lea.hbm %s1900_s15, 32 }
 0x9f2   :  { %p1489_p13 = scmp.ne.s32.totalorder %s1900_s15, %s1488_s10  ;;  %p1492_p0 = scmp.lt.u32.totalorder %s1488_s10, %s1900_s15 }
 0x9f4   :  { %p1494_p1 = pnand %p1492_p0, %p1489_p13 }
 0x9f6   :  { %1497 = shalt.err (!%p1494_p1)
}
 0x9f7   :  { %1063 = dma.vmem_to_hbm [thread:$0]  %s1061_s23, 32, %s1900_s15, [#allocation3]  }
 0x9f8   :  { %1498 = dma.done.wait [#allocation3], 32  }
 0x9f9   :  { %1499 = vsyncadd [#allocation3], 4294967264 }
 0x9fa   :  { %1500 = dma.done.wait [#allocation5], 32  }
 0x9fb   :  { %1501 = vsyncadd [#allocation5], 4294967264 }
 0x9fc   :  { %1080 = vsyncpa [#allocation3], 1 }
 0x9fd   :  { %1081 = vsyncpa [#allocation5], 1 }

</bundles_post_ra>
